<compile_context>
chip_gen: v5e
topology: v5e:2x2
jax: 0.10.0
libtpu: 0.0.40
codegen_flags: <defaults>
</compile_context>

<pallas_src>
import jax
import jax.numpy as jnp
from jax.experimental import pallas as pl
from jax.experimental.pallas import tpu as pltpu

_MAX_TILE_B = 1024     # cap on rows per grid step (x tile = 1024*7*4 B = 28 KB)
_SINGLE_TILE_B = 256   # at/below this, one exact tile beats splitting across cores


def _simplenet_kernel(x_ref, w1_ref, b1_ref, w2_ref, b2_ref, out_ref):
    # x_ref:  (TILE_B, In)   w1_ref: (In, H)   b1_ref: (1, H)
    # w2_ref: (1, H)         b2_ref: (1, 1) in SMEM
    # out_ref: (1, TILE_B)  -- batch mapped onto the 128-lane axis (lane-dense)
    x = x_ref[...]
    # fc1 + ReLU on the MXU, f32 accumulation (Mosaic masks the K padding).
    h = jnp.dot(x, w1_ref[...], preferred_element_type=jnp.float32) + b1_ref[...]
    h = jnp.maximum(h, 0.0)                                    # (TILE_B, H)
    # fc2: (B,H)@(H,1) as a VPU multiply + XLU lane reduction.
    # (If a bundle dump shows the XLU slot binding at large TILE_B, move this
    #  to the idle MXU as h @ w2_col and store (TILE_B, 1) blocks instead.)
    y = jnp.sum(h * w2_ref[...], axis=-1) + b2_ref[0, 0]       # (TILE_B,)
    out_ref[...] = y[None, :].astype(out_ref.dtype)


def _choose_tile(batch):
    """Pick (tile_b, n_tiles) for the batch grid."""
    if batch <= _SINGLE_TILE_B:
        # One tile covering the whole batch: block == full dim, so no (8,128)
        # alignment requirement and no grid-step overhead.
        return batch, 1
    # >= 2 tiles so v7x can shard across its two TensorCores.  When the tile is
    # not the full batch dim, it must be a multiple of 128 for the lane-dense
    # (1, tile_b) output block (and hence a multiple of 8 for the x block).
    tile = min(_MAX_TILE_B, ((batch + 1) // 2 + 127) // 128 * 128)
    return tile, pl.cdiv(batch, tile)


def simplenet_forward(x, w1, b1, w2, b2):
    """x: (B, In) f32, w1: (In, H), b1: (1, H), w2: (1, H), b2: (1, 1) -> (B, 1)."""
    B, in_size = x.shape
    H = w1.shape[1]
    assert w1.shape == (in_size, H) and b1.shape == (1, H)
    assert w2.shape == (1, H) and b2.shape == (1, 1)

    tile_b, n_tiles = _choose_tile(B)

    out = pl.pallas_call(
        _simplenet_kernel,
        out_shape=jax.ShapeDtypeStruct((1, B), jnp.float32),
        grid=(n_tiles,),
        in_specs=[
            # x tile per step; lane dim == full array dim (7), no wrapper pad.
            pl.BlockSpec((tile_b, in_size), lambda i: (i, 0)),
            pl.BlockSpec((in_size, H), lambda i: (0, 0)),        # w1 resident
            pl.BlockSpec((1, H), lambda i: (0, 0)),              # b1 resident
            pl.BlockSpec((1, H), lambda i: (0, 0)),              # w2 row resident
            pl.BlockSpec(memory_space=pltpu.MemorySpace.SMEM),   # b2 scalar in SMEM
        ],
        out_specs=pl.BlockSpec((1, tile_b), lambda i: (0, i)),
        compiler_params=pltpu.CompilerParams(
            dimension_semantics=("parallel",),  # shard batch tiles across TCs (v7x)
        ),
    )(x, w1, b1, w2, b2)

    # Back to the PyTorch nn.Linear output layout (B, 1).
    return out.reshape(B, 1)


def init_params(key, input_size, hidden_size):
    """Deterministic init mimicking torch.nn.Linear default U(-1/sqrt(fan_in), +)."""
    k1, k2, k3, k4 = jax.random.split(key, 4)
    bound1 = 1.0 / jnp.sqrt(input_size)
    bound2 = 1.0 / jnp.sqrt(hidden_size)
    w1 = jax.random.uniform(k1, (input_size, hidden_size), jnp.float32, -bound1, bound1)
    b1 = jax.random.uniform(k2, (1, hidden_size), jnp.float32, -bound1, bound1)
    # fc2 weight stored as a (1, H) row so the kernel does a VPU mul + lane reduce.
    w2 = jax.random.uniform(k3, (1, hidden_size), jnp.float32, -bound2, bound2)
    b2 = jax.random.uniform(k4, (1, 1), jnp.float32, -bound2, bound2)
    return w1, b1, w2, b2


if __name__ == "__main__":
    input_size = 7
    hidden_size = 128

    key = jax.random.PRNGKey(0)
    kp, kx1, kx2 = jax.random.split(key, 3)
    w1, b1, w2, b2 = init_params(kp, input_size, hidden_size)

    def reference(xv):
        return jnp.maximum(xv @ w1 + b1, 0.0) @ w2.T + b2

    # Case 1: the module's actual use case — two 7-"character-code" inputs
    # (mot / couleur), i.e. batch = 2 -> single exact tile, grid of 1.
    x_small = jax.random.uniform(kx1, (2, input_size), jnp.float32, 65.0, 122.0)
    out_small = jax.block_until_ready(simplenet_forward(x_small, w1, b1, w2, b2))
    assert out_small.shape == (2, 1)
    err_s = float(jnp.max(jnp.abs(out_small - reference(x_small))))
    assert jnp.allclose(out_small, reference(x_small), atol=1e-2, rtol=1e-4), err_s

    # Case 2: larger batch exercising the multi-tile path with a partial
    # (over-read, masked-write) last block; still tiny data-wise.
    x_big = jax.random.uniform(kx2, (300, input_size), jnp.float32, 65.0, 122.0)
    out_big = jax.block_until_ready(simplenet_forward(x_big, w1, b1, w2, b2))
    assert out_big.shape == (300, 1)
    err_b = float(jnp.max(jnp.abs(out_big - reference(x_big))))
    assert jnp.allclose(out_big, reference(x_big), atol=1e-2, rtol=1e-4), err_b

    # TODO(synk): comparer_entrees (MSELoss + SGD step + argmax reward) is
    # host-side training-driver logic, not part of the forward kernel.
    print("KERNEL_OK")
</pallas_src>

<mosaic_0001>
module attributes {stable_mosaic.version = 11 : i64} {
  func.func @_simplenet_kernel(%arg0: i32, %arg1: memref<2x7xf32, #tpu.memory_space<vmem>>, %arg2: memref<7x128xf32, #tpu.memory_space<vmem>>, %arg3: memref<1x128xf32, #tpu.memory_space<vmem>>, %arg4: memref<1x128xf32, #tpu.memory_space<vmem>>, %arg5: memref<1x1xf32, #tpu.memory_space<smem>>, %arg6: memref<1x2xf32, #tpu.memory_space<vmem>>) attributes {dimension_semantics = [#tpu.dimension_semantics<parallel>], iteration_bounds = array<i64: 1>, scalar_prefetch = 0 : i64, scratch_operands = 0 : i64, tpu.core_type = #tpu.core_type<tc>, window_params = [{transform_indices = @transform_0, window_bounds = array<i64: 2, 7>}, {pipeline_mode = #tpu.pipeline_mode<synchronous>, transform_indices = @transform_1, window_bounds = array<i64: 7, 128>}, {pipeline_mode = #tpu.pipeline_mode<synchronous>, transform_indices = @transform_2, window_bounds = array<i64: 1, 128>}, {pipeline_mode = #tpu.pipeline_mode<synchronous>, transform_indices = @transform_3, window_bounds = array<i64: 1, 128>}, {transform_indices = @transform_4, window_bounds = array<i64: 1, 1>}, {transform_indices = @transform_5, window_bounds = array<i64: 1, 2>}]} {
    %c0 = arith.constant 0 : index
    %c0_0 = arith.constant 0 : index
    %0 = vector.load %arg1[%c0, %c0_0] : memref<2x7xf32, #tpu.memory_space<vmem>>, vector<2x7xf32>
    %c0_1 = arith.constant 0 : index
    %c0_2 = arith.constant 0 : index
    %1 = vector.load %arg2[%c0_1, %c0_2] : memref<7x128xf32, #tpu.memory_space<vmem>>, vector<7x128xf32>
    %cst = arith.constant dense<0.000000e+00> : vector<2x128xf32>
    %2 = tpu.matmul %0, %1, %cst {dimension_numbers = #tpu.dot_dimension_numbers<[1], [0], [0], [1], [0, 0, 1, 1], [], []>} : vector<2x7xf32>, vector<7x128xf32>, vector<2x128xf32> -> vector<2x128xf32>
    %c0_3 = arith.constant 0 : index
    %c0_4 = arith.constant 0 : index
    %3 = vector.load %arg3[%c0_3, %c0_4] : memref<1x128xf32, #tpu.memory_space<vmem>>, vector<1x128xf32>
    %4 = vector.broadcast %3 : vector<1x128xf32> to vector<2x128xf32>
    %5 = arith.addf %2, %4 : vector<2x128xf32>
    %cst_5 = arith.constant 0.000000e+00 : f32
    %6 = vector.broadcast %cst_5 : f32 to vector<2x128xf32>
    %7 = arith.maximumf %5, %6 : vector<2x128xf32>
    %c0_6 = arith.constant 0 : index
    %c0_7 = arith.constant 0 : index
    %8 = vector.load %arg4[%c0_6, %c0_7] : memref<1x128xf32, #tpu.memory_space<vmem>>, vector<1x128xf32>
    %9 = vector.broadcast %8 : vector<1x128xf32> to vector<2x128xf32>
    %10 = arith.mulf %7, %9 : vector<2x128xf32>
    %cst_8 = arith.constant dense<0.000000e+00> : vector<2xf32>
    %11 = vector.multi_reduction <add>, %10, %cst_8 [1] : vector<2x128xf32> to vector<2xf32>
    %c0_9 = arith.constant 0 : index
    %c0_10 = arith.constant 0 : index
    %12 = memref.load %arg5[%c0_9, %c0_10] : memref<1x1xf32, #tpu.memory_space<smem>>
    %13 = vector.broadcast %12 : f32 to vector<2xf32>
    %14 = arith.addf %11, %13 : vector<2xf32>
    %15 = vector.shape_cast %14 : vector<2xf32> to vector<1x2xf32>
    %c0_11 = arith.constant 0 : index
    %c0_12 = arith.constant 0 : index
    %16 = vector.load %arg6[%c0_11, %c0_12] : memref<1x2xf32, #tpu.memory_space<vmem>>, vector<1x2xf32>
    tpu.vector_store %arg6[%c0_11, %c0_12], %15 {strides = array<i32>} : memref<1x2xf32, #tpu.memory_space<vmem>>, vector<1x2xf32>,
    return
  }
  func.func @transform_0(%arg0: i32) -> (i32, i32) {
    %c0_i32 = arith.constant 0 : i32
    %c0_i32_0 = arith.constant 0 : i32
    return %arg0, %c0_i32 : i32, i32
  }
  func.func @transform_1(%arg0: i32) -> (i32, i32) {
    %c0_i32 = arith.constant 0 : i32
    %c0_i32_0 = arith.constant 0 : i32
    %c0_i32_1 = arith.constant 0 : i32
    return %c0_i32, %c0_i32_0 : i32, i32
  }
  func.func @transform_2(%arg0: i32) -> (i32, i32) {
    %c0_i32 = arith.constant 0 : i32
    %c0_i32_0 = arith.constant 0 : i32
    %c0_i32_1 = arith.constant 0 : i32
    return %c0_i32, %c0_i32_0 : i32, i32
  }
  func.func @transform_3(%arg0: i32) -> (i32, i32) {
    %c0_i32 = arith.constant 0 : i32
    %c0_i32_0 = arith.constant 0 : i32
    %c0_i32_1 = arith.constant 0 : i32
    return %c0_i32, %c0_i32_0 : i32, i32
  }
  func.func @transform_4(%arg0: i32) -> (i32, i32) {
    %c0_i32 = arith.constant 0 : i32
    %c0_i32_0 = arith.constant 0 : i32
    %c0_i32_1 = arith.constant 0 : i32
    return %c0_i32, %c0_i32_0 : i32, i32
  }
  func.func @transform_5(%arg0: i32) -> (i32, i32) {
    %c0_i32 = arith.constant 0 : i32
    %c0_i32_0 = arith.constant 0 : i32
    return %c0_i32, %arg0 : i32, i32
  }
}

</mosaic_0001>

<bundles_post_ra>
// kernel: tpu_custom_call.1
= control target key start
LH: loop header
LB: loop body
LE: loop exit
PB: predicated region body
PF: predicated region fallthrough
CT: control target
= control target key end

     0   :  { %11 = vsyncpa [#allocation4], 0  ;;  %s215_s0 = inlined_call_operand.vmem [shape: f32[2,7], index: 0, kind: input, shape index: {}]   ;;  %s216_s1 = inlined_call_operand.hbm [shape: f32[7,128], index: 1, kind: input, shape index: {}]   ;;  %s217_s2 = inlined_call_operand.vmem [shape: f32[1,128], index: 2, kind: input, shape index: {}]   ;;  %s218_s3 = inlined_call_operand.vmem [shape: f32[1,128], index: 3, kind: input, shape index: {}]   ;;  %s219_s4 = inlined_call_operand.<no memory space> [shape: f32[1,1], index: 4, kind: input, shape index: {}]   ;;  %s220_s5 = inlined_call_operand.hbm [shape: f32[1,2], index: 5, kind: output, shape index: {}]  }
   0x1   :  { %12 = vsyncpa [#allocation5], 0  ;;  %s20_s20 = sshll.u32 %s216_s1, 4  ;;  %s165_s21 = smov [#allocation3]   ;;  %s21_s20 = int_to_ptr.hbm [resolvable:$true] %s20_s20 }
   0x2   :  { %s22_s22 = sshll.u32 %s165_s21, 4  ;;  %s23_s22 = int_to_ptr.vmem [resolvable:$true] %s22_s22 }
   0x3   :  { %25 = dma.hbm_to_vmem [thread:$0]  %s21_s20, 128, %s23_s22, [#allocation4]  }
   0x4   :  { %161 = dma.done.wait [#allocation4], 128  }
   0x5   :  { %162 = vsyncadd [#allocation4], 4294967168  ;;  %vm46_vm0 = vcmask 1046528   ;;  %vm42_vm1 = vcmask 56320   ;;  %v37_v0 = vld [vmem:[#allocation3] sm:$0x7f]  ;;  %v84_v9 = vlaneseq  ;;  %v81_v10 = vstv %s219_s4 }
   0x6   :  { %v36_v1 = vld [vmem:[%s215_s0] sm:$0x3]  ;;  %107 = vmatpush.msk.msra.mxu0 %vm46_vm0, %v37_v0  ;;  %vm76_vm2 = vcmask 1041408   ;;  %s166_s29 = smov [#allocation6]   ;;  %s97_s7 = sshll.u32 %s220_s5, 4  ;;  %vm88_vm3 = vcmask 8192   ;;  %s98_s7 = int_to_ptr.hbm [resolvable:$true] %s97_s7 }
   0x7   :  { %108 = vmatmul.msk.f32.vlgmr.msra.gmra.mxu0 %vm42_vm1, %v36_v1  ;;  %v111_v2 = vld [vmem:[%s217_s2] ss:$0 sm:$0xff]  ;;  %v85_v11 = vand.u32 127, %v84_v9  ;;  %s95_s2 = sshll.u32 %s166_s29, 4  ;;  %s96_s2 = int_to_ptr.vmem [resolvable:$true] %s95_s2 }
   0x8   :  { %v112_v5 = vld [vmem:[%s218_s3] ss:$0 sm:$0xff] }
  0x84   :  { %v67_v3 = vpop.f32.mrf.mxu0 }
  0x85   :  { %v68_v4 = vadd.f32 %v111_v2, %v67_v3 }
  0x87   :  { %v70_v6 = vmax.f32 %v68_v4, 0.0 }
  0x89   :  { %v75_v7 = vmul.f32 %v112_v5, %v70_v6 }
  0x8b   :  { %v77_v8 = vsel %vm76_vm2, %v75_v7, 0.0 }
  0x8c   :  { %78 = vadd.xlane.f32.xlu0 %v77_v8 }
  0xff   :  { %v79_v12 = vpop.xlane.xlu0 %78 }
 0x100   :  { %v82_v13 = vadd.f32 %v81_v10, %v79_v12 }
 0x102   :  { %v86_v14 = vperm.slane %v82_v13, %v85_v11 }
 0x104   :  { %89 = vst.msk [vmem:[#allocation6] sm:$0x1] %vm88_vm3, %v86_v14 }
 0x105   :  { %100 = dma.vmem_to_hbm [thread:$0]  %s96_s2, 16, %s98_s7, [#allocation5]  }
 0x106   :  { %163 = dma.done.wait [#allocation5], 16  }
 0x107   :  { %164 = vsyncadd [#allocation5], 4294967280 }
 0x108   :  { %105 = vsyncpa [#allocation4], 1 }
 0x109   :  { %106 = vsyncpa [#allocation5], 1 }

</bundles_post_ra>
